<compile_context>
chip_gen: v7x
topology: tpu7x:2x2x1
jax: 0.10.0
libtpu: 0.0.40
codegen_flags: <defaults>
</compile_context>

<pallas_src>
import functools
import math

import jax
import jax.numpy as jnp
from jax import lax
from jax.experimental import pallas as pl
from jax.experimental.pallas import tpu as pltpu


def _round_up(x, m):
    return ((x + m - 1) // m) * m


def _sublane_multiple(dtype):
    # Min-tile sublane count: 8 for 32-bit, 16 for 16-bit, 32 for 8-bit dtypes.
    itemsize = jnp.dtype(dtype).itemsize
    return max(8, 32 // max(itemsize, 1))


def _vmem_capacity_bytes():
    try:
        cap = int(pltpu.get_tpu_info().vmem_capacity_bytes)
        if cap > 0:
            return cap
    except Exception:
        pass
    return 64 * 1024 * 1024   # conservative default: v7x per-TensorCore VMEM


# ---------------------------------------------------------------------------
# Kernel 1: MXU one-hot path (small vocab).
# ---------------------------------------------------------------------------
def _embedding_onehot_kernel(ids_ref, emb_ref, out_ref):
    """out = one_hot(ids) @ emb, one (T, D) block per grid step.

    ids_ref : (T, 1) int32 VMEM block (ids already clamped to [0, V-1]).
    emb_ref : (V, D) table block, constant index_map -> DMA'd HBM->VMEM once.
    out_ref : (T, D) output tile (sublane/lane dense).
    """
    T = out_ref.shape[0]
    V = emb_ref.shape[0]
    ids = ids_ref[...]                                      # (T, 1)
    cols = lax.broadcasted_iota(jnp.int32, (T, V), 1)       # column ids on lanes
    one_hot = (cols == ids).astype(emb_ref.dtype)           # (T, V)
    out_ref[...] = jnp.dot(
        one_hot, emb_ref[...], preferred_element_type=jnp.float32
    ).astype(out_ref.dtype)


# ---------------------------------------------------------------------------
# Kernel 2: VMEM-resident gather path (larger vocab).
# ---------------------------------------------------------------------------
def _embedding_gather_kernel(ids_ref, emb_hbm_ref, out_ref, table_ref, copy_sem,
                             *, group):
    """Gather T rows from a single-buffered VMEM-resident copy of the table.

    ids_ref     : (N_pad,) int32 in SMEM (scalar prefetch) -- flat token ids.
    emb_hbm_ref : (V, D) table left in HBM (memory_space=pl.ANY).
    out_ref     : (T, D) output tile.
    table_ref   : (V, D) VMEM scratch -- resident copy, exactly one buffer.
    copy_sem    : DMA completion semaphore for the one-time table copy.
    group       : rows per store group (dtype sublane multiple: 8/16/32).
    """
    # One-time HBM -> VMEM table copy.  Correct because the grid axis is
    # "arbitrary" (sequential on one TensorCore) and scratch persists across
    # grid steps.
    @pl.when(pl.program_id(0) == 0)
    def _():
        cp = pltpu.make_async_copy(emb_hbm_ref, table_ref, copy_sem)
        cp.start()
        cp.wait()

    block_tokens = out_ref.shape[0]
    base = pl.program_id(0) * block_tokens
    num_groups = block_tokens // group

    def body(g, carry):
        start = pl.multiple_of(g * group, group)
        # `group` dynamic row loads, then ONE sublane-dense (group, D) store
        # instead of `group` masked single-sublane stores.
        rows = [table_ref[pl.ds(ids_ref[base + start + r], 1), :]
                for r in range(group)]
        out_ref[pl.ds(start, group), :] = jnp.concatenate(rows, axis=0)
        return carry

    # unroll=2 keeps 2*group rows of loads in flight to hide VMEM load latency.
    lax.fori_loop(0, num_groups, body, 0, unroll=2)


# ---------------------------------------------------------------------------
# Wrapper / dispatch.
# ---------------------------------------------------------------------------
def embedding_lookup(emb, sent, *, block_tokens=512, onehot_vocab_max=2048):
    """emb: (V, D) table; sent: int ids of any shape -> sent.shape + (D,)."""
    emb = jnp.asarray(emb)
    V, D = emb.shape
    sent = jnp.asarray(sent)
    batch_shape = sent.shape
    N = math.prod(batch_shape)

    itemsize = jnp.dtype(emb.dtype).itemsize
    sub = _sublane_multiple(emb.dtype)
    table_bytes = V * D * itemsize

    # torch.nn.Embedding raises on out-of-range ids; here we clamp so the
    # in-kernel index is always in bounds (documented divergence).
    # TODO(synk): optional host-side id range validation flag.
    ids = jnp.clip(sent.reshape(-1).astype(jnp.int32), 0, V - 1)

    # Tokens per grid step, rounded to the dtype sublane multiple so the
    # (T, D) output tile stays sublane/lane dense.
    T = min(int(block_tokens), _round_up(max(N, 1), sub))
    T = _round_up(T, sub)
    N_pad = _round_up(max(N, 1), T)
    if N_pad > N:
        ids = jnp.concatenate([ids, jnp.zeros((N_pad - N,), jnp.int32)])

    out_block_bytes = T * D * itemsize
    capacity = _vmem_capacity_bytes()
    headroom = 4 << 20

    # ---------------- MXU one-hot fast path (small vocab) ----------------
    onehot_need = (2 * table_bytes          # auto-pipelined table (2 buffers)
                   + 2 * out_block_bytes    # double-buffered output tile
                   + 2 * T * 128 * 4        # (T, 1) ids blocks, lane-padded
                   + T * V * 4              # in-flight one-hot tile
                   + headroom)
    if V <= onehot_vocab_max and onehot_need <= int(0.9 * capacity):
        ids2d = ids.reshape(N_pad, 1)
        vmem_limit = int(max(32 << 20, min(onehot_need, capacity)))
        out_flat = pl.pallas_call(
            _embedding_onehot_kernel,
            out_shape=jax.ShapeDtypeStruct((N_pad, D), emb.dtype),
            grid_spec=pltpu.PrefetchScalarGridSpec(
                num_scalar_prefetch=0,
                grid=(N_pad // T,),
                in_specs=[
                    pl.BlockSpec((T, 1), lambda i: (i, 0)),
                    # Whole table, constant index_map -> DMA'd once.
                    pl.BlockSpec((V, D), lambda i: (0, 0)),
                ],
                out_specs=pl.BlockSpec((T, D), lambda i: (i, 0)),
            ),
            compiler_params=pltpu.CompilerParams(
                # Disjoint output tiles -> shardable across v7x cores; the
                # (small) table re-read per core is cheap.
                dimension_semantics=("parallel",),
                vmem_limit_bytes=vmem_limit,
            ),
        )(ids2d, emb)
        return out_flat[:N].reshape(batch_shape + (D,))

    # ---------------- single-buffered resident-table gather path ----------
    gather_need = table_bytes + 2 * out_block_bytes + headroom
    if gather_need > int(0.9 * capacity):
        # TODO(synk): add a double-buffered HBM row-gather DMA path for vocab
        # tables that do not fit in VMEM even single-buffered.
        raise NotImplementedError(
            "embedding table too large for the VMEM-resident gather path")
    vmem_limit = int(max(32 << 20, min(gather_need, capacity)))

    out_flat = pl.pallas_call(
        functools.partial(_embedding_gather_kernel, group=sub),
        out_shape=jax.ShapeDtypeStruct((N_pad, D), emb.dtype),
        grid_spec=pltpu.PrefetchScalarGridSpec(
            num_scalar_prefetch=1,            # flat token ids -> SMEM
            grid=(N_pad // T,),
            in_specs=[
                # Table stays in HBM; single-buffered copy lives in scratch.
                pl.BlockSpec(memory_space=pl.ANY),
            ],
            out_specs=pl.BlockSpec((T, D), lambda i, ids_smem: (i, 0)),
            scratch_shapes=[
                pltpu.VMEM((V, D), emb.dtype),     # resident table (1 buffer)
                pltpu.SemaphoreType.DMA(()),       # table-copy semaphore
            ],
        ),
        compiler_params=pltpu.CompilerParams(
            # "arbitrary": required for the program_id==0 copy guard and avoids
            # duplicating the table HBM read across v7x TensorCores.
            dimension_semantics=("arbitrary",),
            vmem_limit_bytes=vmem_limit,
        ),
    )(ids, emb)
    return out_flat[:N].reshape(batch_shape + (D,))


class EmbeddingLayer:
    """JAX/Pallas counterpart of the PyTorch EmbeddingLayer module."""

    def __init__(self, emb):
        # Preserve the caller's dtype (torch keeps the given tensor's dtype).
        self.emb = jnp.asarray(emb)

    def __call__(self, sent):
        return embedding_lookup(self.emb, sent)


if __name__ == "__main__":
    key = jax.random.PRNGKey(0)
    k_emb, k_s1, k_s2, k_emb_big, k_s3 = jax.random.split(key, 5)

    # --- small-vocab config: exercises the MXU one-hot path ---------------
    vocab_size, embedding_size = 64, 128
    batch, seq = 2, 8
    emb = jax.random.normal(k_emb, (vocab_size, embedding_size), jnp.float32)
    sent = jax.random.randint(k_s1, (batch, seq), 0, vocab_size, dtype=jnp.int32)

    layer = EmbeddingLayer(emb)
    out = jax.block_until_ready(layer(sent))
    ref = jnp.take(emb, sent, axis=0)
    assert out.shape == (batch, seq, embedding_size)
    assert jnp.allclose(out, ref), "Pallas embedding mismatch (one-hot path)"

    # Ragged token count -> tail padding / slicing path.
    sent2 = jax.random.randint(k_s2, (3, 5), 0, vocab_size, dtype=jnp.int32)
    out2 = jax.block_until_ready(layer(sent2))
    assert out2.shape == (3, 5, embedding_size)
    assert jnp.allclose(out2, jnp.take(emb, sent2, axis=0)), \
        "Pallas embedding mismatch (one-hot tail)"

    # --- larger-vocab config: exercises the resident-table gather path ----
    vocab_big = 4096
    emb_big = jax.random.normal(k_emb_big, (vocab_big, embedding_size), jnp.float32)
    sent3 = jax.random.randint(k_s3, (3, 7), 0, vocab_big, dtype=jnp.int32)
    layer_big = EmbeddingLayer(emb_big)
    out3 = jax.block_until_ready(layer_big(sent3))
    assert out3.shape == (3, 7, embedding_size)
    assert jnp.allclose(out3, jnp.take(emb_big, sent3, axis=0)), \
        "Pallas embedding mismatch (gather path)"

    print("KERNEL_OK")
</pallas_src>

<mosaic_0001>
module attributes {stable_mosaic.version = 11 : i64} {
  func.func @_embedding_onehot_kernel(%arg0: i32, %arg1: memref<16x1xi32, #tpu.memory_space<vmem>>, %arg2: memref<64x128xf32, #tpu.memory_space<vmem>>, %arg3: memref<16x128xf32, #tpu.memory_space<vmem>>) attributes {dimension_semantics = [#tpu.dimension_semantics<parallel>], iteration_bounds = array<i64: 1>, scalar_prefetch = 0 : i64, scratch_operands = 0 : i64, tpu.core_type = #tpu.core_type<tc>, window_params = [{transform_indices = @transform_0, window_bounds = array<i64: 16, 1>}, {pipeline_mode = #tpu.pipeline_mode<synchronous>, transform_indices = @transform_1, window_bounds = array<i64: 64, 128>}, {transform_indices = @transform_2, window_bounds = array<i64: 16, 128>}]} {
    %c0 = arith.constant 0 : index
    %c0_0 = arith.constant 0 : index
    %0 = vector.load %arg1[%c0, %c0_0] : memref<16x1xi32, #tpu.memory_space<vmem>>, vector<16x1xi32>
    %1 = tpu.iota {dimensions = array<i32: 1>} : vector<16x64xi32>
    %2 = vector.broadcast %0 : vector<16x1xi32> to vector<16x64xi32>
    %3 = arith.cmpi eq, %1, %2 : vector<16x64xi32>
    %4 = arith.extui %3 : vector<16x64xi1> to vector<16x64xi32>
    %5 = arith.sitofp %4 : vector<16x64xi32> to vector<16x64xf32>
    %c0_1 = arith.constant 0 : index
    %c0_2 = arith.constant 0 : index
    %6 = vector.load %arg2[%c0_1, %c0_2] : memref<64x128xf32, #tpu.memory_space<vmem>>, vector<64x128xf32>
    %cst = arith.constant dense<0.000000e+00> : vector<16x128xf32>
    %7 = tpu.matmul %5, %6, %cst {dimension_numbers = #tpu.dot_dimension_numbers<[1], [0], [0], [1], [0, 0, 1, 1], [], []>} : vector<16x64xf32>, vector<64x128xf32>, vector<16x128xf32> -> vector<16x128xf32>
    %c0_3 = arith.constant 0 : index
    %c0_4 = arith.constant 0 : index
    %8 = vector.load %arg3[%c0_3, %c0_4] : memref<16x128xf32, #tpu.memory_space<vmem>>, vector<16x128xf32>
    tpu.vector_store %arg3[%c0_3, %c0_4], %7 {strides = array<i32>} : memref<16x128xf32, #tpu.memory_space<vmem>>, vector<16x128xf32>,
    return
  }
  func.func @transform_0(%arg0: i32) -> (i32, i32) {
    %c0_i32 = arith.constant 0 : i32
    %c0_i32_0 = arith.constant 0 : i32
    return %arg0, %c0_i32 : i32, i32
  }
  func.func @transform_1(%arg0: i32) -> (i32, i32) {
    %c0_i32 = arith.constant 0 : i32
    %c0_i32_0 = arith.constant 0 : i32
    %c0_i32_1 = arith.constant 0 : i32
    return %c0_i32, %c0_i32_0 : i32, i32
  }
  func.func @transform_2(%arg0: i32) -> (i32, i32) {
    %c0_i32 = arith.constant 0 : i32
    %c0_i32_0 = arith.constant 0 : i32
    return %arg0, %c0_i32 : i32, i32
  }
}

</mosaic_0001>

<bundles_post_ra>
// kernel: tpu_custom_call.1
= control target key start
LH: loop header
LB: loop body
LE: loop exit
PB: predicated region body
PF: predicated region fallthrough
CT: control target
= control target key end

     0   :  { %7 = vsyncpa [#allocation3], 0  ;;  %s312_s0 = inlined_call_operand.vmem [shape: s32[16,1], index: 0, kind: input, shape index: {}]   ;;  %s313_s1 = inlined_call_operand.hbm [shape: f32[64,128], index: 1, kind: input, shape index: {}]   ;;  %s314_s2 = inlined_call_operand.hbm [shape: f32[16,128], index: 2, kind: output, shape index: {}]  }
   0x1   :  { %8 = vsyncpa [#allocation4], 0  ;;  %s255_s9 = smov [#allocation2]   ;;  %s207_s13 = scalar_lea.hbm %s313_s1, 1024 }
   0x2   :  { %s16_s10 = sshll.u32 %s255_s9, 4  ;;  %p208_p0 = scmp.ne.s32.totalorder %s313_s1, %s207_s13  ;;  %s17_s10 = int_to_ptr.vmem [resolvable:$true] %s16_s10 }
   0x3   :  { %p211_p1 = scmp.lt.u32.totalorder %s207_s13, %s313_s1 }
   0x5   :  { %p213_p2 = pnand %p211_p1, %p208_p0 }
   0x7   :  { %216 = shalt.err (!%p213_p2)
}
   0x8   :  { %s217_s18 = scalar_lea.vmem %s17_s10, 1024  ;;  %p222_p4 = scmp.lt.s32.totalorder %s17_s10, %s17_s10 }
   0x9   :  { %p218_p3 = scmp.ne.s32.totalorder %s17_s10, %s217_s18  ;;  %p223_p5 = scmp.lt.s32.totalorder %s217_s18, %s217_s18 }
   0xb   :  { %p224_p6 = por %p223_p5, %p222_p4 }
   0xd   :  { %p225_p7 = pnand %p224_p6, %p218_p3 }
   0xf   :  { %228 = shalt.err (!%p225_p7)
}
  0x10   :  { %s256_s19 = smov 128   ;;  %s257_s20 = smov 8  }
  0x11   :  { %22 = dma.hbm_to_vmem [thread:$0]  %s313_s1, 1024, %s17_s10, [#allocation3], %s256_s19, %s256_s19, %s257_s20  }
  0x12   :  { %251 = dma.done.wait [#allocation3], 1024  }
  0x13   :  { %252 = vsyncadd [#allocation3], 4294966272  ;;  %v258_v0 = vmov 0   ;;  %v26_v1 = vld [vmem:[%s312_s0] sm:$0xff]  ;;  %v43_v3 = vld [vmem:[#allocation2 + $0x8] sm:$0xff]  ;;  %v28_v15 = vlaneseq  ;;  %vm50_vm0 = vcmask 523264  }
  0x14   :  { %206 = vset.pattern.permute.xlu0 %v258_v0  ;;  %v42_v2 = vld [vmem:[#allocation2] sm:$0xff]  ;;  %v44_v4 = vld [vmem:[#allocation2 + $0x10] sm:$0xff]  ;;  %v45_v5 = vld [vmem:[#allocation2 + $0x18] sm:$0xff]  ;;  %v259_v18 = vmov 0.0  }
  0x15   :  { %31 = vperm.xlu0 %206, %v26_v1   ;;  %v27_v6 = vld [vmem:[%s312_s0 + $0x8] sm:$0xff]  ;;  %v184_v7 = vpack.c.bf16 %v43_v3, %v42_v2  ;;  %v188_v8 = vpack.c.bf16 %v45_v5, %v44_v4  ;;  %v46_v9 = vld [vmem:[#allocation2 + $0x20] sm:$0xff]  ;;  %v48_v12 = vld [vmem:[#allocation2 + $0x30] sm:$0xff]  ;;  %v29_v16 = vand.u32 127, %v28_v15  ;;  %s260_s0 = smov [#allocation5]  }
  0x16   :  { %v47_v10 = vld [vmem:[#allocation2 + $0x28] sm:$0xff]  ;;  %v49_v13 = vld [vmem:[#allocation2 + $0x38] sm:$0xff]  ;;  %s139_s1 = sshll.u32 %s260_s0, 4  ;;  %s140_s1 = int_to_ptr.vmem [resolvable:$true] %s139_s1 }
  0x17   :  { %185 = vmatprep.subr.bf16.mxu0 %v184_v7  ;;  %v192_v11 = vpack.c.bf16 %v47_v10, %v46_v9  ;;  %v196_v14 = vpack.c.bf16 %v49_v13, %v48_v12  ;;  %s229_s27 = scalar_lea.vmem %s140_s1, 256  ;;  %p234_p9 = scmp.lt.s32.totalorder %s140_s1, %s140_s1 }
  0x18   :  { %187 = vmatpush3.bf16.msra.mxu0 %v184_v7  ;;  %p230_p8 = scmp.ne.s32.totalorder %s140_s1, %s229_s27  ;;  %p235_p10 = scmp.lt.s32.totalorder %s229_s27, %s229_s27 }
  0x19   :  { %34 = vperm.xlu0 %206, %v27_v6   ;;  %189 = vmatprep.subr.bf16.mxu0 %v188_v8 }
  0x1a   :  { %p236_p11 = por %p235_p10, %p234_p9 }
  0x1c   :  { %191 = vmatpush3.bf16.msra.mxu0 %v188_v8  ;;  %p237_p12 = pnand %p236_p11, %p230_p8 }
  0x1d   :  { %193 = vmatprep.subr.bf16.mxu0 %v192_v11 }
  0x20   :  { %195 = vmatpush3.bf16.msra.mxu0 %v192_v11 }
  0x21   :  { %197 = vmatprep.subr.bf16.mxu0 %v196_v14 }
  0x24   :  { %199 = vmatpush3.bf16.msra.mxu0 %v196_v14 }
  0x94   :  { %v32_v17 = vpop.permute.xlu0 %31 }
  0x95   :  { %vm36_vm1 = vcmp.eq.s32.totalorder %v29_v16, %v32_v17 }
  0x96   :  { %v151_v19 = vsel %vm36_vm1, 1.0, %v259_v18 }
  0x97   :  { %181 = vmatprep.mubr.msk.f32.mxu0 %vm50_vm0, %v151_v19 }
  0x98   :  { %v35_v20 = vpop.permute.xlu0 %34 }
  0x99   :  { %vm37_vm2 = vcmp.eq.s32.totalorder %v29_v16, %v35_v20 }
  0x9a   :  { %v152_v21 = vsel %vm37_vm2, 1.0, %v259_v18 }
  0x9b   :  { %182 = vmatmul.mubr.msk.f32.vlgmr.msra.gmra.mrb[0].mxu0 %vm50_vm0, %v152_v21 }
 0x16e   :  { %v183_v22 = vpop.f32.mrb[0].mxu0 }
 0x16f   :  { %133 = vst [vmem:[#allocation5 + $0x8] sm:$0xff] %v183_v22  ;;  %v123_v23 = vpop.f32.mrb[1].mxu0 }
 0x170   :  { %132 = vst [vmem:[#allocation5] sm:$0xff] %v123_v23 }
 0x171   :  { %240 = shalt.err (!%p237_p12)
}
 0x172   :  { %s241_s30 = scalar_lea.hbm %s314_s2, 256 }
 0x173   :  { %p242_p13 = scmp.ne.s32.totalorder %s314_s2, %s241_s30  ;;  %p245_p0 = scmp.lt.u32.totalorder %s241_s30, %s314_s2 }
 0x175   :  { %p247_p1 = pnand %p245_p0, %p242_p13 }
 0x177   :  { %250 = shalt.err (!%p247_p1)
}
 0x178   :  { %145 = dma.vmem_to_hbm [thread:$0]  %s140_s1, 256, %s314_s2, [#allocation4], %s256_s19, %s256_s19, %s257_s20  }
 0x179   :  { %253 = dma.done.wait [#allocation4], 256  }
 0x17a   :  { %254 = vsyncadd [#allocation4], 4294967040 }
 0x17b   :  { %149 = vsyncpa [#allocation3], 1 }
 0x17c   :  { %150 = vsyncpa [#allocation4], 1 }

</bundles_post_ra>
